<compile_context>
chip_gen: v7x
topology: tpu7x:2x2x1
jax: 0.10.0
libtpu: 0.0.40
codegen_flags: <defaults>
</compile_context>

<pallas_src>
import math

import jax
import jax.numpy as jnp
from jax import lax
from jax.experimental import pallas as pl
from jax.experimental.pallas import tpu as pltpu

EPS = 1e-5   # torch BatchNorm1d default eps
CP = 128     # lane-padded channel width (TPU vreg lane count)


# ----------------------------------------------------------------------------
# pallas_call helper: whole arrays as single VMEM blocks (N <= 16, Cp = 128).
# TODO(synk): for large graphs, tile the [N,N] adjacency with a row grid
#             (BlockSpecs + "parallel" dimension_semantics) instead of a single
#             whole-array block to stay under v7x's 64 MiB VMEM.
# ----------------------------------------------------------------------------
def _vmem_call(kernel, out_shape, *args):
    if isinstance(out_shape, (tuple, list)):
        out_specs = tuple(
            pl.BlockSpec(memory_space=pltpu.MemorySpace.VMEM) for _ in out_shape
        )
        out_shape = tuple(out_shape)
    else:
        out_specs = pl.BlockSpec(memory_space=pltpu.MemorySpace.VMEM)
    return pl.pallas_call(
        kernel,
        out_shape=out_shape,
        in_specs=[pl.BlockSpec(memory_space=pltpu.MemorySpace.VMEM)] * len(args),
        out_specs=out_specs,
    )(*args)


# ----------------------------------------------------------------------------
# Fused GCN conv helper (traced inside kernels, not a separate pallas_call).
#   adj_t = A^T (A[src,dst] = w), improved normalization (self-loop weight 2):
#   out[t] = dinv[t] * ( sum_s A[s,t]*dinv[s]*xw[s] + 2*dinv[t]*xw[t] ) + b
# ----------------------------------------------------------------------------
def _gcn_propagate(adj_t, xw, bias):
    deg = jnp.sum(adj_t, axis=1, keepdims=True) + 2.0          # (N,1) in-degree + 2
    dinv = jnp.where(deg > 0.0, lax.rsqrt(deg), 0.0)           # (N,1) column layout
    z = dinv * xw                                              # (N,Cp)
    agg = jnp.dot(adj_t, z, preferred_element_type=jnp.float32)  # A^T @ z (NN matmul)
    return dinv * (agg + 2.0 * z) + bias


def _batchnorm(y, gamma, beta):
    # training-mode batch statistics (biased variance), one pass: sum & sum-of-squares
    inv_n = 1.0 / y.shape[0]
    m = jnp.sum(y, axis=0, keepdims=True) * inv_n
    q = jnp.sum(y * y, axis=0, keepdims=True) * inv_n
    v = jnp.maximum(q - m * m, 0.0)
    return (y - m) * lax.rsqrt(v + EPS) * gamma + beta


# ----------------------------------------------------------------------------
# Pallas kernels (one per encoder / decoder layer, plus the TopK score)
# ----------------------------------------------------------------------------
def _encoder_fused_kernel(x_ref, at_ref, lw_ref, lb_ref, g1_ref, b1_ref,
                          cw_ref, cb_ref, g2_ref, b2_ref, o_ref):
    # Lin -> ReLU -> BatchNorm1d -> GCNConv(improved, folded norm) -> BatchNorm -> ReLU
    x = x_ref[...]
    y = jnp.dot(x, lw_ref[...], preferred_element_type=jnp.float32) + lb_ref[...]
    y = jnp.maximum(y, 0.0)
    y = _batchnorm(y, g1_ref[...], b1_ref[...])

    xw = jnp.dot(y, cw_ref[...], preferred_element_type=jnp.float32)
    conv = _gcn_propagate(at_ref[...], xw, cb_ref[...])

    o_ref[...] = jnp.maximum(_batchnorm(conv, g2_ref[...], b2_ref[...]), 0.0)


def _decoder_relu_kernel(x_ref, at_ref, w_ref, b_ref, o_ref, emb_ref):
    xw = jnp.dot(x_ref[...], w_ref[...], preferred_element_type=jnp.float32)
    out = _gcn_propagate(at_ref[...], xw, b_ref[...])
    emb_ref[...] = out                    # pre-activation embedding (DecoderLayer)
    o_ref[...] = jnp.maximum(out, 0.0)


def _decoder_kernel(x_ref, at_ref, w_ref, b_ref, o_ref):
    xw = jnp.dot(x_ref[...], w_ref[...], preferred_element_type=jnp.float32)
    o_ref[...] = _gcn_propagate(at_ref[...], xw, b_ref[...])


def _topk_score_kernel(x_ref, w_ref, o_ref):
    # TopKPooling score: tanh( (x . w) / ||w||_2 ).  VPU multiply + lane reduce,
    # rsqrt on EUP; deliberately kept off the MXU (tiny matvec).
    w = w_ref[...]                                            # (1, Cp), padding is 0
    inv_norm = lax.rsqrt(jnp.sum(w * w))
    s = jnp.sum(x_ref[...] * w, axis=1, keepdims=True) * inv_norm
    o_ref[...] = jnp.tanh(s)                                  # (N, 1)


# ----------------------------------------------------------------------------
# Layer wrappers (JAX glue around the kernels)
# ----------------------------------------------------------------------------
def encoder_forward(p, x, adj_t, pool_ratio):
    perm = None
    if pool_ratio < 1:
        n = x.shape[0]
        score = _vmem_call(
            _topk_score_kernel, jax.ShapeDtypeStruct((n, 1), jnp.float32),
            x, p["pool_w"],
        )[:, 0]
        k = int(math.ceil(pool_ratio * n))
        # TODO(synk): data-dependent top-k selection / permutation gather stays in
        # plain JAX (could be moved into BlockSpecs via scalar prefetch + pl.Element).
        perm = jnp.argsort(-score)[:k]
        x = x[perm] * score[perm][:, None]      # multiplier = 1
        adj_t = adj_t[perm][:, perm]            # dense equivalent of filter_adj
    out = _vmem_call(
        _encoder_fused_kernel,
        jax.ShapeDtypeStruct((x.shape[0], CP), jnp.float32),
        x, adj_t, p["lin_w"], p["lin_b"], p["bn1_g"], p["bn1_b"],
        p["conv_w"], p["conv_b"], p["bn2_g"], p["bn2_b"],
    )
    return out, adj_t, perm, out                # embedding == out


def decoder_forward(p, x, adj_t, act):
    n = x.shape[0]
    if act:
        out, emb = _vmem_call(
            _decoder_relu_kernel,
            (jax.ShapeDtypeStruct((n, CP), jnp.float32),
             jax.ShapeDtypeStruct((n, CP), jnp.float32)),
            x, adj_t, p["conv_w"], p["conv_b"],
        )
        return out, emb
    out = _vmem_call(
        _decoder_kernel, jax.ShapeDtypeStruct((n, CP), jnp.float32),
        x, adj_t, p["conv_w"], p["conv_b"],
    )
    return out, out


def base_unet_forward(params, x, adj, channels, pool_ratios):
    # Transpose the dense adjacency ONCE; pooled levels reuse gathered sub-blocks,
    # so encoder/decoder convs at the same level share the same A^T with no
    # re-normalization kernels or HBM writebacks.
    adj_t = jnp.transpose(adj)

    embeddings = {}
    xs, adjts, perms = [], [adj_t], []
    for i in range(len(channels) - 1):
        x, adj_t, perm, emb = encoder_forward(
            params[f"encoder{i}"], x, adj_t, pool_ratios[i])
        embeddings[f"encoder{i}"] = emb[:, : channels[i + 1]]
        xs.append(x)
        adjts.append(adj_t)
        perms.append(perm)
    for i in range(len(channels) - 2, 0, -1):
        res = xs[i - 1]
        adj_t_i = adjts[i + 1]
        perm = perms[i]
        x, emb = decoder_forward(params[f"decoder{i}"], x, adj_t_i, act=True)
        up = jnp.zeros_like(res)
        up = up.at[perm].set((x + res[perm]) / 2.0)     # unpool scatter (plain JAX)
        x = up
        embeddings[f"decoder{i}"] = emb[:, : channels[i]]
    x, emb = decoder_forward(params["decoder0"], x, adjts[0], act=False)
    embeddings["decoder0"] = emb[:, : channels[0]]
    return x[:, : channels[0]], embeddings


# ----------------------------------------------------------------------------
# Deterministic parameter init (true PyTorch shapes) + persistent lane padding
# ----------------------------------------------------------------------------
def init_params(key, channels, pool_ratios):
    params = {}
    keys = iter(jax.random.split(key, 128))

    def nrm(shape, scale=0.2):
        return scale * jax.random.normal(next(keys), shape, dtype=jnp.float32)

    for i in range(len(channels) - 1):
        cin, cout = channels[i], channels[i + 1]
        p = {}
        if pool_ratios[i] < 1:
            p["pool_w"] = nrm((1, cin))                       # TopKPooling weight
        p["lin_w"] = nrm((cin, cout))                         # Lin(cin, cout)
        p["lin_b"] = nrm((cout,))
        p["bn1_g"] = jnp.ones((1, cout), jnp.float32)         # BatchNorm1d affine
        p["bn1_b"] = jnp.zeros((1, cout), jnp.float32)
        p["conv_w"] = nrm((cout, cout))                       # GCNConv(cout, cout)
        p["conv_b"] = jnp.zeros((cout,), jnp.float32)
        p["bn2_g"] = jnp.ones((1, cout), jnp.float32)
        p["bn2_b"] = jnp.zeros((1, cout), jnp.float32)
        params[f"encoder{i}"] = p
    for i in range(len(channels) - 1, 0, -1):
        cin, cout = channels[i], channels[i - 1]
        params[f"decoder{i-1}"] = {
            "conv_w": nrm((cin, cout)),                       # GCNConv(cin, cout)
            "conv_b": jnp.zeros((cout,), jnp.float32),
        }
    return params


def _pad2(a, rows, cols):
    out = jnp.zeros((rows, cols), jnp.float32)
    return out.at[: a.shape[0], : a.shape[1]].set(a)


def pad_params(params):
    # Zero-pad every channel dimension to CP=128 lanes once, up front.  Padded
    # columns stay exactly zero through the whole network, so semantics on the
    # real channels are unchanged while every kernel store is lane-dense.
    padded = {}
    for name, p in params.items():
        q = {}
        for k, v in p.items():
            v2 = v.reshape(1, -1) if v.ndim == 1 else v
            if k in ("lin_w", "conv_w"):
                q[k] = _pad2(v2, CP, CP)
            else:
                q[k] = _pad2(v2, 1, CP)
        padded[name] = q
    return padded


# ----------------------------------------------------------------------------
if __name__ == "__main__":
    in_channels = 4
    hidden_channels = [8, 16]
    pool_ratios_arg = [0.5]
    channels = [in_channels] + hidden_channels                # [4, 8, 16]
    pool_ratios = [1] + pool_ratios_arg                       # [1, 0.5]

    N = 16
    key = jax.random.PRNGKey(0)
    kx, kp = jax.random.split(key)
    x = jax.random.normal(kx, (N, in_channels), dtype=jnp.float32)

    # Undirected ring graph, no self loops (edge_index shape [2, 32]).
    src = jnp.arange(N, dtype=jnp.int32)
    dst = (src + 1) % N
    edge_index = jnp.stack(
        [jnp.concatenate([src, dst]), jnp.concatenate([dst, src])], axis=0
    )
    edge_weight = jnp.ones((edge_index.shape[1],), jnp.float32)   # x.new_ones(E)
    adj = (
        jnp.zeros((N, N), jnp.float32)
        .at[edge_index[0], edge_index[1]]
        .add(edge_weight)
    )

    params = pad_params(init_params(kp, channels, pool_ratios))
    x_pad = jnp.zeros((N, CP), jnp.float32).at[:, :in_channels].set(x)

    out, embeddings = base_unet_forward(params, x_pad, adj, channels, pool_ratios)
    out = jax.block_until_ready(out)
    assert out.shape == (N, in_channels)
    assert embeddings["decoder0"].shape == (N, in_channels)
    assert bool(jnp.all(jnp.isfinite(out)))
    print("KERNEL_OK")
</pallas_src>

<mosaic_0001>
module attributes {stable_mosaic.version = 11 : i64} {
  func.func @_encoder_fused_kernel(%arg0: memref<16x128xf32, #tpu.memory_space<vmem>>, %arg1: memref<16x16xf32, #tpu.memory_space<vmem>>, %arg2: memref<128x128xf32, #tpu.memory_space<vmem>>, %arg3: memref<1x128xf32, #tpu.memory_space<vmem>>, %arg4: memref<1x128xf32, #tpu.memory_space<vmem>>, %arg5: memref<1x128xf32, #tpu.memory_space<vmem>>, %arg6: memref<128x128xf32, #tpu.memory_space<vmem>>, %arg7: memref<1x128xf32, #tpu.memory_space<vmem>>, %arg8: memref<1x128xf32, #tpu.memory_space<vmem>>, %arg9: memref<1x128xf32, #tpu.memory_space<vmem>>, %arg10: memref<16x128xf32, #tpu.memory_space<vmem>>) attributes {dimension_semantics = [], scalar_prefetch = 0 : i64, scratch_operands = 0 : i64, tpu.core_type = #tpu.core_type<tc>} {
    %c0 = arith.constant 0 : index
    %c0_0 = arith.constant 0 : index
    %0 = vector.load %arg0[%c0, %c0_0] : memref<16x128xf32, #tpu.memory_space<vmem>>, vector<16x128xf32>
    %c0_1 = arith.constant 0 : index
    %c0_2 = arith.constant 0 : index
    %1 = vector.load %arg2[%c0_1, %c0_2] : memref<128x128xf32, #tpu.memory_space<vmem>>, vector<128x128xf32>
    %cst = arith.constant dense<0.000000e+00> : vector<16x128xf32>
    %2 = tpu.matmul %0, %1, %cst {dimension_numbers = #tpu.dot_dimension_numbers<[1], [0], [0], [1], [0, 0, 1, 1], [], []>} : vector<16x128xf32>, vector<128x128xf32>, vector<16x128xf32> -> vector<16x128xf32>
    %c0_3 = arith.constant 0 : index
    %c0_4 = arith.constant 0 : index
    %3 = vector.load %arg3[%c0_3, %c0_4] : memref<1x128xf32, #tpu.memory_space<vmem>>, vector<1x128xf32>
    %4 = vector.broadcast %3 : vector<1x128xf32> to vector<16x128xf32>
    %5 = arith.addf %2, %4 : vector<16x128xf32>
    %cst_5 = arith.constant 0.000000e+00 : f32
    %6 = vector.broadcast %cst_5 : f32 to vector<16x128xf32>
    %7 = arith.maximumf %5, %6 : vector<16x128xf32>
    %c0_6 = arith.constant 0 : index
    %c0_7 = arith.constant 0 : index
    %8 = vector.load %arg4[%c0_6, %c0_7] : memref<1x128xf32, #tpu.memory_space<vmem>>, vector<1x128xf32>
    %c0_8 = arith.constant 0 : index
    %c0_9 = arith.constant 0 : index
    %9 = vector.load %arg5[%c0_8, %c0_9] : memref<1x128xf32, #tpu.memory_space<vmem>>, vector<1x128xf32>
    %cst_10 = arith.constant dense<0.000000e+00> : vector<128xf32>
    %10 = vector.multi_reduction <add>, %7, %cst_10 [0] : vector<16x128xf32> to vector<128xf32>
    %11 = vector.shape_cast %10 : vector<128xf32> to vector<1x128xf32>
    %cst_11 = arith.constant 6.250000e-02 : f32
    %12 = vector.broadcast %cst_11 : f32 to vector<1x128xf32>
    %13 = arith.mulf %11, %12 : vector<1x128xf32>
    %14 = arith.mulf %7, %7 : vector<16x128xf32>
    %cst_12 = arith.constant dense<0.000000e+00> : vector<128xf32>
    %15 = vector.multi_reduction <add>, %14, %cst_12 [0] : vector<16x128xf32> to vector<128xf32>
    %16 = vector.shape_cast %15 : vector<128xf32> to vector<1x128xf32>
    %cst_13 = arith.constant 6.250000e-02 : f32
    %17 = vector.broadcast %cst_13 : f32 to vector<1x128xf32>
    %18 = arith.mulf %16, %17 : vector<1x128xf32>
    %19 = arith.mulf %13, %13 : vector<1x128xf32>
    %20 = arith.subf %18, %19 : vector<1x128xf32>
    %cst_14 = arith.constant 0.000000e+00 : f32
    %21 = vector.broadcast %cst_14 : f32 to vector<1x128xf32>
    %22 = arith.maximumf %20, %21 : vector<1x128xf32>
    %23 = vector.broadcast %13 : vector<1x128xf32> to vector<16x128xf32>
    %24 = arith.subf %7, %23 : vector<16x128xf32>
    %cst_15 = arith.constant 9.99999974E-6 : f32
    %25 = vector.broadcast %cst_15 : f32 to vector<1x128xf32>
    %26 = arith.addf %22, %25 : vector<1x128xf32>
    %27 = math.rsqrt %26 : vector<1x128xf32>
    %28 = vector.broadcast %27 : vector<1x128xf32> to vector<16x128xf32>
    %29 = arith.mulf %24, %28 : vector<16x128xf32>
    %30 = vector.broadcast %8 : vector<1x128xf32> to vector<16x128xf32>
    %31 = arith.mulf %29, %30 : vector<16x128xf32>
    %32 = vector.broadcast %9 : vector<1x128xf32> to vector<16x128xf32>
    %33 = arith.addf %31, %32 : vector<16x128xf32>
    %c0_16 = arith.constant 0 : index
    %c0_17 = arith.constant 0 : index
    %34 = vector.load %arg6[%c0_16, %c0_17] : memref<128x128xf32, #tpu.memory_space<vmem>>, vector<128x128xf32>
    %cst_18 = arith.constant dense<0.000000e+00> : vector<16x128xf32>
    %35 = tpu.matmul %33, %34, %cst_18 {dimension_numbers = #tpu.dot_dimension_numbers<[1], [0], [0], [1], [0, 0, 1, 1], [], []>} : vector<16x128xf32>, vector<128x128xf32>, vector<16x128xf32> -> vector<16x128xf32>
    %c0_19 = arith.constant 0 : index
    %c0_20 = arith.constant 0 : index
    %36 = vector.load %arg1[%c0_19, %c0_20] : memref<16x16xf32, #tpu.memory_space<vmem>>, vector<16x16xf32>
    %c0_21 = arith.constant 0 : index
    %c0_22 = arith.constant 0 : index
    %37 = vector.load %arg7[%c0_21, %c0_22] : memref<1x128xf32, #tpu.memory_space<vmem>>, vector<1x128xf32>
    %cst_23 = arith.constant dense<0.000000e+00> : vector<16xf32>
    %38 = vector.multi_reduction <add>, %36, %cst_23 [1] : vector<16x16xf32> to vector<16xf32>
    %39 = vector.shape_cast %38 : vector<16xf32> to vector<16x1xf32>
    %cst_24 = arith.constant 2.000000e+00 : f32
    %40 = vector.broadcast %cst_24 : f32 to vector<16x1xf32>
    %41 = arith.addf %39, %40 : vector<16x1xf32>
    %cst_25 = arith.constant 0.000000e+00 : f32
    %42 = vector.broadcast %cst_25 : f32 to vector<16x1xf32>
    %43 = arith.cmpf ogt, %41, %42 : vector<16x1xf32>
    %44 = math.rsqrt %41 : vector<16x1xf32>
    %cst_26 = arith.constant 0.000000e+00 : f32
    %45 = vector.broadcast %cst_26 : f32 to vector<16x1xf32>
    %46 = arith.select %43, %44, %45 : vector<16x1xi1>, vector<16x1xf32>
    %47 = vector.broadcast %46 : vector<16x1xf32> to vector<16x128xf32>
    %48 = arith.mulf %47, %35 : vector<16x128xf32>
    %cst_27 = arith.constant dense<0.000000e+00> : vector<16x128xf32>
    %49 = tpu.matmul %36, %48, %cst_27 {dimension_numbers = #tpu.dot_dimension_numbers<[1], [0], [0], [1], [0, 0, 1, 1], [], []>} : vector<16x16xf32>, vector<16x128xf32>, vector<16x128xf32> -> vector<16x128xf32>
    %cst_28 = arith.constant 2.000000e+00 : f32
    %50 = vector.broadcast %cst_28 : f32 to vector<16x128xf32>
    %51 = arith.mulf %50, %48 : vector<16x128xf32>
    %52 = arith.addf %49, %51 : vector<16x128xf32>
    %53 = vector.broadcast %46 : vector<16x1xf32> to vector<16x128xf32>
    %54 = arith.mulf %53, %52 : vector<16x128xf32>
    %55 = vector.broadcast %37 : vector<1x128xf32> to vector<16x128xf32>
    %56 = arith.addf %54, %55 : vector<16x128xf32>
    %c0_29 = arith.constant 0 : index
    %c0_30 = arith.constant 0 : index
    %57 = vector.load %arg8[%c0_29, %c0_30] : memref<1x128xf32, #tpu.memory_space<vmem>>, vector<1x128xf32>
    %c0_31 = arith.constant 0 : index
    %c0_32 = arith.constant 0 : index
    %58 = vector.load %arg9[%c0_31, %c0_32] : memref<1x128xf32, #tpu.memory_space<vmem>>, vector<1x128xf32>
    %cst_33 = arith.constant dense<0.000000e+00> : vector<128xf32>
    %59 = vector.multi_reduction <add>, %56, %cst_33 [0] : vector<16x128xf32> to vector<128xf32>
    %60 = vector.shape_cast %59 : vector<128xf32> to vector<1x128xf32>
    %cst_34 = arith.constant 6.250000e-02 : f32
    %61 = vector.broadcast %cst_34 : f32 to vector<1x128xf32>
    %62 = arith.mulf %60, %61 : vector<1x128xf32>
    %63 = arith.mulf %56, %56 : vector<16x128xf32>
    %cst_35 = arith.constant dense<0.000000e+00> : vector<128xf32>
    %64 = vector.multi_reduction <add>, %63, %cst_35 [0] : vector<16x128xf32> to vector<128xf32>
    %65 = vector.shape_cast %64 : vector<128xf32> to vector<1x128xf32>
    %cst_36 = arith.constant 6.250000e-02 : f32
    %66 = vector.broadcast %cst_36 : f32 to vector<1x128xf32>
    %67 = arith.mulf %65, %66 : vector<1x128xf32>
    %68 = arith.mulf %62, %62 : vector<1x128xf32>
    %69 = arith.subf %67, %68 : vector<1x128xf32>
    %cst_37 = arith.constant 0.000000e+00 : f32
    %70 = vector.broadcast %cst_37 : f32 to vector<1x128xf32>
    %71 = arith.maximumf %69, %70 : vector<1x128xf32>
    %72 = vector.broadcast %62 : vector<1x128xf32> to vector<16x128xf32>
    %73 = arith.subf %56, %72 : vector<16x128xf32>
    %cst_38 = arith.constant 9.99999974E-6 : f32
    %74 = vector.broadcast %cst_38 : f32 to vector<1x128xf32>
    %75 = arith.addf %71, %74 : vector<1x128xf32>
    %76 = math.rsqrt %75 : vector<1x128xf32>
    %77 = vector.broadcast %76 : vector<1x128xf32> to vector<16x128xf32>
    %78 = arith.mulf %73, %77 : vector<16x128xf32>
    %79 = vector.broadcast %57 : vector<1x128xf32> to vector<16x128xf32>
    %80 = arith.mulf %78, %79 : vector<16x128xf32>
    %81 = vector.broadcast %58 : vector<1x128xf32> to vector<16x128xf32>
    %82 = arith.addf %80, %81 : vector<16x128xf32>
    %cst_39 = arith.constant 0.000000e+00 : f32
    %83 = vector.broadcast %cst_39 : f32 to vector<16x128xf32>
    %84 = arith.maximumf %82, %83 : vector<16x128xf32>
    %c0_40 = arith.constant 0 : index
    %c0_41 = arith.constant 0 : index
    %85 = vector.load %arg10[%c0_40, %c0_41] : memref<16x128xf32, #tpu.memory_space<vmem>>, vector<16x128xf32>
    tpu.vector_store %arg10[%c0_40, %c0_41], %84 {strides = array<i32>} : memref<16x128xf32, #tpu.memory_space<vmem>>, vector<16x128xf32>,
    return
  }
}

</mosaic_0001>

<bundles_post_ra>
// kernel: tpu_custom_call.1
= control target key start
LH: loop header
LB: loop body
LE: loop exit
PB: predicated region body
PF: predicated region fallthrough
CT: control target
= control target key end

     0   :  { %15 = vsyncpa [#allocation3], 0  ;;  %s1013_s0 = inlined_call_operand.hbm [shape: f32[16,128], index: 0, kind: input, shape index: {}]   ;;  %s1014_s1 = inlined_call_operand.hbm [shape: f32[16,16], index: 1, kind: input, shape index: {}]   ;;  %s1015_s2 = inlined_call_operand.hbm [shape: f32[128,128], index: 2, kind: input, shape index: {}]   ;;  %s1016_s3 = inlined_call_operand.vmem [shape: f32[1,128], index: 3, kind: input, shape index: {}]   ;;  %s1017_s4 = inlined_call_operand.vmem [shape: f32[1,128], index: 4, kind: input, shape index: {}]   ;;  %s1018_s5 = inlined_call_operand.vmem [shape: f32[1,128], index: 5, kind: input, shape index: {}]   ;;  %s1019_s6 = inlined_call_operand.hbm [shape: f32[128,128], index: 6, kind: input, shape index: {}]   ;;  %s1020_s7 = inlined_call_operand.vmem [shape: f32[1,128], index: 7, kind: input, shape index: {}]   ;;  %s1021_s8 = inlined_call_operand.vmem [shape: f32[1,128], index: 8, kind: input, shape index: {}]   ;;  %s1022_s9 = inlined_call_operand.vmem [shape: f32[1,128], index: 9, kind: input, shape index: {}]   ;;  %s1023_s10 = inlined_call_operand.hbm [shape: f32[16,128], index: 10, kind: output, shape index: {}]  }
   0x1   :  { %16 = vsyncpa [#allocation6], 0 }
   0x2   :  { %17 = vsyncpa [#allocation9], 0 }
   0x3   :  { %18 = vsyncpa [#allocation4], 0  ;;  %s836_s13 = smov [#allocation5]   ;;  %s837_s15 = smov [#allocation2]  }
   0x4   :  { %s36_s14 = sshll.u32 %s836_s13, 4  ;;  %s24_s16 = sshll.u32 %s837_s15, 4  ;;  %s37_s14 = int_to_ptr.vmem [resolvable:$true] %s36_s14  ;;  %s898_s16 = int_to_ptr.vmem [resolvable:$true] %s24_s16 }
   0x5   :  { %s718_s19 = scalar_lea.hbm %s1014_s1, 256 }
   0x6   :  { %p719_p0 = scmp.ne.s32.totalorder %s1014_s1, %s718_s19  ;;  %p722_p1 = scmp.lt.u32.totalorder %s718_s19, %s1014_s1 }
   0x8   :  { %p724_p2 = pnand %p722_p1, %p719_p0 }
   0xa   :  { %727 = shalt.err (!%p724_p2)
}
   0xb   :  { %s728_s24 = scalar_lea.vmem %s37_s14, 256  ;;  %p733_p4 = scmp.lt.s32.totalorder %s37_s14, %s37_s14 }
   0xc   :  { %p729_p3 = scmp.ne.s32.totalorder %s37_s14, %s728_s24  ;;  %p734_p5 = scmp.lt.s32.totalorder %s728_s24, %s728_s24 }
   0xe   :  { %p735_p6 = por %p734_p5, %p733_p4 }
  0x10   :  { %p736_p7 = pnand %p735_p6, %p729_p3 }
  0x12   :  { %739 = shalt.err (!%p736_p7)
}
  0x13   :  { %s838_s25 = smov 128   ;;  %s839_s26 = smov 8  }
  0x14   :  { %42 = dma.hbm_to_vmem [thread:$0]  %s1014_s1, 256, %s37_s14, [#allocation6], %s838_s25, %s838_s25, %s839_s26  }
  0x15   :  { %s740_s11 = scalar_lea.hbm %s1013_s0, 256 }
  0x16   :  { %p741_p8 = scmp.ne.s32.totalorder %s1013_s0, %s740_s11  ;;  %p744_p9 = scmp.lt.u32.totalorder %s740_s11, %s1013_s0 }
  0x18   :  { %p746_p10 = pnand %p744_p9, %p741_p8 }
  0x1a   :  { %749 = shalt.err (!%p746_p10)
}
  0x1b   :  { %s750_s18 = scalar_lea.vmem %s898_s16, 256  ;;  %p755_p12 = scmp.lt.s32.totalorder %s898_s16, %s898_s16 }
  0x1c   :  { %p751_p11 = scmp.ne.s32.totalorder %s898_s16, %s750_s18  ;;  %p756_p13 = scmp.lt.s32.totalorder %s750_s18, %s750_s18 }
  0x1e   :  { %p757_p0 = por %p756_p13, %p755_p12 }
  0x20   :  { %p758_p1 = pnand %p757_p0, %p751_p11 }
  0x22   :  { %761 = shalt.err (!%p758_p1)
}
  0x23   :  { %30 = dma.hbm_to_vmem [thread:$0]  %s1013_s0, 256, %s898_s16, [#allocation3], %s838_s25, %s838_s25, %s839_s26  }
  0x24   :  { %s840_s19 = smov [#allocation7]   ;;  %s841_s21 = smov [#allocation8]  }
  0x25   :  { %s48_s20 = sshll.u32 %s840_s19, 4  ;;  %s66_s22 = sshll.u32 %s841_s21, 4  ;;  %s49_s20 = int_to_ptr.vmem [resolvable:$true] %s48_s20  ;;  %s935_s22 = int_to_ptr.vmem [resolvable:$true] %s66_s22 }
  0x26   :  { %s762_s27 = scalar_lea.hbm %s1015_s2, 2048 }
  0x27   :  { %p763_p2 = scmp.ne.s32.totalorder %s1015_s2, %s762_s27  ;;  %p766_p3 = scmp.lt.u32.totalorder %s762_s27, %s1015_s2 }
  0x29   :  { %p768_p4 = pnand %p766_p3, %p763_p2 }
  0x2b   :  { %771 = shalt.err (!%p768_p4)
}
  0x2c   :  { %s772_s0 = scalar_lea.vmem %s49_s20, 2048  ;;  %p777_p6 = scmp.lt.s32.totalorder %s49_s20, %s49_s20 }
  0x2d   :  { %p773_p5 = scmp.ne.s32.totalorder %s49_s20, %s772_s0  ;;  %p778_p7 = scmp.lt.s32.totalorder %s772_s0, %s772_s0 }
  0x2f   :  { %p779_p8 = por %p778_p7, %p777_p6 }
  0x31   :  { %p780_p9 = pnand %p779_p8, %p773_p5 }
  0x33   :  { %783 = shalt.err (!%p780_p9)
}
  0x34   :  { %54 = dma.hbm_to_vmem [thread:$0]  %s1015_s2, 2048, %s49_s20, [#allocation6], %s838_s25, %s838_s25, %s839_s26  }
  0x35   :  { %s784_s17 = scalar_lea.hbm %s1019_s6, 2048 }
  0x36   :  { %p785_p10 = scmp.ne.s32.totalorder %s1019_s6, %s784_s17  ;;  %p788_p11 = scmp.lt.u32.totalorder %s784_s17, %s1019_s6 }
  0x38   :  { %p790_p12 = pnand %p788_p11, %p785_p10 }
  0x3a   :  { %793 = shalt.err (!%p790_p12)
}
  0x3b   :  { %s794_s21 = scalar_lea.vmem %s935_s22, 2048  ;;  %p799_p0 = scmp.lt.s32.totalorder %s935_s22, %s935_s22 }
  0x3c   :  { %p795_p13 = scmp.ne.s32.totalorder %s935_s22, %s794_s21  ;;  %p800_p1 = scmp.lt.s32.totalorder %s794_s21, %s794_s21 }
  0x3e   :  { %p801_p2 = por %p800_p1, %p799_p0 }
  0x40   :  { %p802_p3 = pnand %p801_p2, %p795_p13 }
  0x42   :  { %805 = shalt.err (!%p802_p3)
}
  0x43   :  { %72 = dma.hbm_to_vmem [thread:$0]  %s1019_s6, 2048, %s935_s22, [#allocation9], %s838_s25, %s838_s25, %s839_s26  }
  0x44   :  { %828 = dma.done.wait [#allocation3], 256  }
  0x45   :  { %829 = vsyncadd [#allocation3], 4294967040 }
  0x46   :  { %830 = dma.done.wait [#allocation6], 2304  }
  0x47   :  { %831 = vsyncadd [#allocation6], 4294964992 }
  0x48   :  { %832 = dma.done.wait [#allocation9], 2048  }
  0x49   :  { %833 = vsyncadd [#allocation9], 4294965248  ;;  %v93_v0 = vld [vmem:[#allocation7] sm:$0xff]  ;;  %v94_v1 = vld [vmem:[#allocation7 + $0x8] sm:$0xff]  ;;  %vm332_vm0 = vcmask 130048   ;;  %s842_s11 = smov [#allocation10]  }
  0x4a   :  { %v95_v2 = vld [vmem:[#allocation7 + $0x10] sm:$0xff]  ;;  %v635_v3 = vpack.c.bf16 %v94_v1, %v93_v0  ;;  %v96_v4 = vld [vmem:[#allocation7 + $0x18] sm:$0xff]  ;;  %v97_v6 = vld [vmem:[#allocation7 + $0x20] sm:$0xff]  ;;  %s496_s0 = sshll.u32 %s842_s11, 4  ;;  %s497_s0 = int_to_ptr.vmem [resolvable:$true] %s496_s0 }
  0x4b   :  { %v639_v5 = vpack.c.bf16 %v96_v4, %v95_v2  ;;  %v98_v7 = vld [vmem:[#allocation7 + $0x28] sm:$0xff]  ;;  %v91_v9 = vld [vmem:[#allocation2] sm:$0xff]  ;;  %v99_v10 = vld [vmem:[#allocation7 + $0x30] sm:$0xff]  ;;  %s806_s16 = scalar_lea.vmem %s497_s0, 256  ;;  %p811_p5 = scmp.lt.s32.totalorder %s497_s0, %s497_s0 }
  0x4c   :  { %636 = vmatprep.subr.bf16.mxu0 %v635_v3  ;;  %v643_v8 = vpack.c.bf16 %v98_v7, %v97_v6  ;;  %v100_v11 = vld [vmem:[#allocation7 + $0x38] sm:$0xff]  ;;  %590 = vmatprep.mubr.f32.mxu0 %v91_v9  ;;  %v101_v13 = vld [vmem:[#allocation7 + $0x40] sm:$0xff]  ;;  %v102_v14 = vld [vmem:[#allocation7 + $0x48] sm:$0xff]  ;;  %p807_p4 = scmp.ne.s32.totalorder %s497_s0, %s806_s16  ;;  %p812_p6 = scmp.lt.s32.totalorder %s806_s16, %s806_s16 }
  0x4d   :  { %638 = vmatpush3.bf16.msra.mxu0 %v635_v3  ;;  %v647_v12 = vpack.c.bf16 %v100_v11, %v99_v10  ;;  %v651_v15 = vpack.c.bf16 %v102_v14, %v101_v13  ;;  %v103_v16 = vld [vmem:[#allocation7 + $0x50] sm:$0xff]  ;;  %v104_v17 = vld [vmem:[#allocation7 + $0x58] sm:$0xff]  ;;  %v105_v19 = vld [vmem:[#allocation7 + $0x60] sm:$0xff] }
  0x4e   :  { %640 = vmatprep.subr.bf16.mxu0 %v639_v5  ;;  %v655_v18 = vpack.c.bf16 %v104_v17, %v103_v16  ;;  %v106_v20 = vld [vmem:[#allocation7 + $0x68] sm:$0xff]  ;;  %v107_v22 = vld [vmem:[#allocation7 + $0x70] sm:$0xff]  ;;  %v108_v23 = vld [vmem:[#allocation7 + $0x78] sm:$0xff]  ;;  %p813_p7 = por %p812_p6, %p811_p5 }
  0x4f   :  { %v659_v21 = vpack.c.bf16 %v106_v20, %v105_v19  ;;  %v663_v24 = vpack.c.bf16 %v108_v23, %v107_v22  ;;  %v92_v25 = vld [vmem:[#allocation2 + $0x8] sm:$0xff]  ;;  %v238_v26 = vld [vmem:[#allocation8] sm:$0xff]  ;;  %v240_v29 = vld [vmem:[#allocation8 + $0x10] sm:$0xff] }
  0x50   :  { %v239_v27 = vld [vmem:[#allocation8 + $0x8] sm:$0xff]  ;;  %v241_v30 = vld [vmem:[#allocation8 + $0x18] sm:$0xff]  ;;  %v242_v32 = vld [vmem:[#allocation8 + $0x20] sm:$0xff]  ;;  %p814_p8 = pnand %p813_p7, %p807_p4 }
  0x51   :  { %642 = vmatpush3.bf16.msra.mxu0 %v639_v5  ;;  %v667_v28 = vpack.c.bf16 %v239_v27, %v238_v26  ;;  %v671_v31 = vpack.c.bf16 %v241_v30, %v240_v29  ;;  %v243_v33 = vld [vmem:[#allocation8 + $0x28] sm:$0xff]  ;;  %v244_v35 = vld [vmem:[#allocation8 + $0x30] sm:$0xff]  ;;  %v245_v36 = vld [vmem:[#allocation8 + $0x38] sm:$0xff] }
  0x52   :  { %644 = vmatprep.subr.bf16.mxu0 %v643_v8  ;;  %v675_v34 = vpack.c.bf16 %v243_v33, %v242_v32  ;;  %v246_v37 = vld [vmem:[#allocation8 + $0x40] sm:$0xff]  ;;  %v679_v38 = vpack.c.bf16 %v245_v36, %v244_v35  ;;  %v247_v39 = vld [vmem:[#allocation8 + $0x48] sm:$0xff]  ;;  %v248_v41 = vld [vmem:[#allocation8 + $0x50] sm:$0xff] }
  0x53   :  { %668 = vmatprep.subr.bf16.mxu1 %v667_v28  ;;  %v683_v40 = vpack.c.bf16 %v247_v39, %v246_v37  ;;  %v249_v42 = vld [vmem:[#allocation8 + $0x58] sm:$0xff]  ;;  %v250_v44 = vld [vmem:[#allocation8 + $0x60] sm:$0xff]  ;;  %v251_v45 = vld [vmem:[#allocation8 + $0x68] sm:$0xff] }
  0x54   :  { %670 = vmatpush3.bf16.msra.mxu1 %v667_v28  ;;  %v687_v43 = vpack.c.bf16 %v249_v42, %v248_v41  ;;  %v691_v46 = vpack.c.bf16 %v251_v45, %v250_v44  ;;  %v252_v47 = vld [vmem:[#allocation8 + $0x70] sm:$0xff]  ;;  %v253_v48 = vld [vmem:[#allocation8 + $0x78] sm:$0xff]  ;;  %v510_v54 = vld [vmem:[%s1016_s3] ss:$0 sm:$0xff] }
  0x55   :  { %646 = vmatpush3.bf16.msra.mxu0 %v643_v8  ;;  %672 = vmatprep.subr.bf16.mxu1 %v671_v31  ;;  %v695_v49 = vpack.c.bf16 %v253_v48, %v252_v47  ;;  %v329_v50 = vld [vmem:[#allocation5] sm:$0xff]  ;;  %v972_v51 = vld [vmem:[#allocation5 + $0x8] sm:$0xff]  ;;  %v511_v22 = vld [vmem:[%s1017_s4] ss:$0 sm:$0xff] }
  0x56   :  { %648 = vmatprep.subr.bf16.mxu0 %v647_v12  ;;  %v333_v52 = vsel %vm332_vm0, %v329_v50, 0.0  ;;  %v336_v53 = vsel %vm332_vm0, %v972_v51, 0.0  ;;  %v515_v48 = vld [vmem:[%s1020_s7] ss:$0 sm:$0xff] }
  0x57   :  { %334 = vadd.xlane.f32.xlu0 %v333_v52 }
  0x58   :  { %674 = vmatpush3.bf16.msra.mxu1 %v671_v31 }
  0x59   :  { %650 = vmatpush3.bf16.msra.mxu0 %v647_v12  ;;  %676 = vmatprep.subr.bf16.mxu1 %v675_v34 }
  0x5a   :  { %652 = vmatprep.subr.bf16.mxu0 %v651_v15 }
  0x5b   :  { %337 = vadd.xlane.f32.xlu0 %v336_v53 }
  0x5c   :  { %678 = vmatpush3.bf16.msra.mxu1 %v675_v34 }
  0x5d   :  { %654 = vmatpush3.bf16.msra.mxu0 %v651_v15  ;;  %680 = vmatprep.subr.bf16.mxu1 %v679_v38 }
  0x5e   :  { %656 = vmatprep.subr.bf16.mxu0 %v655_v18 }
  0x60   :  { %682 = vmatpush3.bf16.msra.mxu1 %v679_v38 }
  0x61   :  { %658 = vmatpush3.bf16.msra.mxu0 %v655_v18  ;;  %684 = vmatprep.subr.bf16.mxu1 %v683_v40 }
  0x62   :  { %660 = vmatprep.subr.bf16.mxu0 %v659_v21 }
  0x64   :  { %686 = vmatpush3.bf16.msra.mxu1 %v683_v40 }
  0x65   :  { %662 = vmatpush3.bf16.msra.mxu0 %v659_v21  ;;  %688 = vmatprep.subr.bf16.mxu1 %v687_v43 }
  0x66   :  { %664 = vmatprep.subr.bf16.mxu0 %v663_v24 }
  0x68   :  { %690 = vmatpush3.bf16.msra.mxu1 %v687_v43 }
  0x69   :  { %666 = vmatpush3.bf16.msra.mxu0 %v663_v24  ;;  %692 = vmatprep.subr.bf16.mxu1 %v691_v46 }
  0x6c   :  { %591 = vmatmul.mubr.f32.vlgmr.msra.gmra.mrb[0].mxu0 %v92_v25  ;;  %694 = vmatpush3.bf16.msra.mxu1 %v691_v46  ;;  %v512_v25 = vld [vmem:[%s1018_s5] ss:$0 sm:$0xff] }
  0x6d   :  { %696 = vmatprep.subr.bf16.mxu1 %v695_v49  ;;  %632 = vmatprep.mubr.msk.f32.mxu0 %vm332_vm0, %v329_v50 }
  0x70   :  { %698 = vmatpush3.bf16.msra.mxu1 %v695_v49 }
  0xe4   :  { %v335_v30 = vpop.xlane.xlu0 %334 }
  0xe5   :  { %v339_v33 = vadd.f32 2.0, %v335_v30 }
  0xe7   :  { %vm341_vm2 = vcmp.gt.f32.partialorder %v339_v33, 0.0 }
  0xe8   :  { %v338_v31 = vpop.xlane.xlu0 %337 }
  0xe9   :  { %v340_v32 = vadd.f32 2.0, %v338_v31 }
  0xeb   :  { %vm342_vm1 = vcmp.gt.f32.partialorder %v340_v32, 0.0 }
 0x13f   :  { %v592_v55 = vpop.f32.mrb[0].mxu0 }
 0x140   :  { %v188_v56 = vadd.f32 %v592_v55, %v510_v54  ;;  %v182_v57 = vpop.f32.mrb[1].mxu0 }
 0x141   :  { %v183_v58 = vadd.f32 %v510_v54, %v182_v57 }
 0x142   :  { %v192_v59 = vmax.f32 %v188_v56, 0.0 }
 0x143   :  { %v191_v60 = vmax.f32 %v183_v58, 0.0 }
 0x144   :  { %v204_v61 = vmul.f32 %v192_v59, %v192_v59 }
 0x145   :  { %v195_v62 = vadd.f32 %v192_v59, %v191_v60  ;;  %v203_v63 = vmul.f32 %v191_v60, %v191_v60 }
 0x147   :  { %v196_v0 = vrot.slane %v195_v62, 4  ;;  %v205_v1 = vadd.f32 %v204_v61, %v203_v63 }
 0x149   :  { %v197_v2 = vadd.f32 %v196_v0, %v195_v62  ;;  %v206_v3 = vrot.slane %v205_v1, 4 }
 0x14b   :  { %v198_v4 = vrot.slane %v197_v2, 2  ;;  %v207_v5 = vadd.f32 %v206_v3, %v205_v1 }
 0x14d   :  { %v199_v6 = vadd.f32 %v198_v4, %v197_v2  ;;  %v208_v7 = vrot.slane %v207_v5, 2 }
 0x14f   :  { %v200_v8 = vrot.slane %v199_v6, 1  ;;  %v209_v9 = vadd.f32 %v208_v7, %v207_v5 }
 0x151   :  { %v201_v10 = vadd.f32 %v200_v8, %v199_v6  ;;  %v210_v11 = vrot.slane %v209_v9, 1 }
 0x153   :  { %v202_v12 = vmul.f32 0.0625, %v201_v10  ;;  %v211_v13 = vadd.f32 %v210_v11, %v209_v9 }
 0x155   :  { %v212_v14 = vmul.f32 0.0625, %v211_v13  ;;  %v213_v15 = vmul.f32 %v202_v12, %v202_v12  ;;  %v216_v16 = vsub.f32 %v191_v60, %v202_v12  ;;  %v217_v17 = vsub.f32 %v192_v59, %v202_v12 }
 0x157   :  { %v214_v18 = vsub.f32 %v212_v14, %v213_v15  ;;  %v516_v15 = vld [vmem:[%s1021_s8] ss:$0 sm:$0xff] }
 0x159   :  { %v215_v19 = vmax.f32 %v214_v18, 0.0  ;;  %v517_v18 = vld [vmem:[%s1022_s9] ss:$0 sm:$0xff] }
 0x15b   :  { %v218_v20 = vadd.f32 1e-05, %v215_v19 }
 0x15d   :  { %710 = vrsqrt.f32 %v218_v20 }
 0x15e   :  { %712 = vrsqrt.f32 %v340_v32 }
 0x15f   :  { %714 = vrsqrt.f32 %v339_v33 }
 0x167   :  { %v711_v21 = vpop.eup %710 }
 0x168   :  { %v220_v23 = vmul.f32 %v711_v21, %v216_v16  ;;  %v221_v24 = vmul.f32 %v711_v21, %v217_v17  ;;  %v713_v34 = vpop.eup %712 }
 0x169   :  { %v715_v35 = vpop.eup %714  ;;  %v346_v37 = vsel %vm342_vm1, %v713_v34, 0.0 }
 0x16a   :  { %v228_v26 = vmul.f32 %v511_v22, %v220_v23  ;;  %v229_v27 = vmul.f32 %v511_v22, %v221_v24  ;;  %v345_v40 = vsel %vm341_vm2, %v715_v35, 0.0 }
 0x16c   :  { %v236_v28 = vadd.f32 %v512_v25, %v228_v26  ;;  %v237_v29 = vadd.f32 %v512_v25, %v229_v27 }
 0x16e   :  { %625 = vmatprep.mubr.f32.mxu1 %v236_v28 }
 0x16f   :  { %626 = vmatmul.mubr.f32.vlgmr.msra.gmra.mrb[0].mxu1 %v237_v29 }
 0x242   :  { %v627_v36 = vpop.f32.mrb[0].mxu1 }
 0x243   :  { %v348_v38 = vmul.f32 %v627_v36, %v346_v37  ;;  %v320_v39 = vpop.f32.mrb[1].mxu1 }
 0x244   :  { %v347_v41 = vmul.f32 %v345_v40, %v320_v39 }
 0x245   :  { %v350_v43 = vmul.f32 2.0, %v348_v38 }
 0x246   :  { %v699_v42 = vpack.c.bf16 %v348_v38, %v347_v41  ;;  %v349_v45 = vmul.f32 2.0, %v347_v41 }
 0x248   :  { %700 = vmatprep.subr.bf16.mxu0 %v699_v42 }
 0x249   :  { %702 = vmatpush3.bf16.msra.mxu0 %v699_v42 }
 0x24c   :  { %633 = vmatmul.mubr.msk.f32.vlgmr.msra.gmra.mrb[2].mxu0 %vm332_vm0, %v972_v51 }
 0x31f   :  { %v634_v44 = vpop.f32.mrb[2].mxu0 }
 0x320   :  { %v429_v46 = vadd.f32 %v634_v44, %v350_v43  ;;  %v423_v47 = vpop.f32.mrb[3].mxu0 }
 0x321   :  { %v424_v49 = vadd.f32 %v423_v47, %v349_v45 }
 0x322   :  { %v433_v50 = vmul.f32 %v429_v46, %v346_v37 }
 0x323   :  { %v432_v52 = vmul.f32 %v424_v49, %v345_v40 }
 0x324   :  { %v441_v53 = vadd.f32 %v515_v48, %v433_v50 }
 0x325   :  { %v440_v54 = vadd.f32 %v515_v48, %v432_v52 }
 0x326   :  { %v453_v55 = vmul.f32 %v441_v53, %v441_v53 }
 0x327   :  { %v444_v56 = vadd.f32 %v441_v53, %v440_v54  ;;  %v452_v57 = vmul.f32 %v440_v54, %v440_v54 }
 0x329   :  { %v445_v58 = vrot.slane %v444_v56, 4  ;;  %v454_v59 = vadd.f32 %v453_v55, %v452_v57 }
 0x32b   :  { %v446_v51 = vadd.f32 %v445_v58, %v444_v56  ;;  %v455_v60 = vrot.slane %v454_v59, 4 }
 0x32d   :  { %v447_v61 = vrot.slane %v446_v51, 2  ;;  %v456_v62 = vadd.f32 %v455_v60, %v454_v59 }
 0x32f   :  { %v448_v63 = vadd.f32 %v447_v61, %v446_v51  ;;  %v457_v0 = vrot.slane %v456_v62, 2 }
 0x331   :  { %v449_v1 = vrot.slane %v448_v63, 1  ;;  %v458_v2 = vadd.f32 %v457_v0, %v456_v62 }
 0x333   :  { %v450_v3 = vadd.f32 %v449_v1, %v448_v63  ;;  %v459_v4 = vrot.slane %v458_v2, 1 }
 0x335   :  { %v451_v5 = vmul.f32 0.0625, %v450_v3  ;;  %v460_v6 = vadd.f32 %v459_v4, %v458_v2 }
 0x337   :  { %v461_v7 = vmul.f32 0.0625, %v460_v6  ;;  %v462_v8 = vmul.f32 %v451_v5, %v451_v5  ;;  %v465_v9 = vsub.f32 %v440_v54, %v451_v5  ;;  %v466_v10 = vsub.f32 %v441_v53, %v451_v5 }
 0x339   :  { %v463_v11 = vsub.f32 %v461_v7, %v462_v8 }
 0x33b   :  { %v464_v12 = vmax.f32 %v463_v11, 0.0 }
 0x33d   :  { %v467_v13 = vadd.f32 1e-05, %v464_v12 }
 0x33f   :  { %716 = vrsqrt.f32 %v467_v13 }
 0x349   :  { %v717_v14 = vpop.eup %716 }
 0x34a   :  { %v469_v16 = vmul.f32 %v717_v14, %v465_v9  ;;  %v470_v17 = vmul.f32 %v717_v14, %v466_v10 }
 0x34c   :  { %v477_v19 = vmul.f32 %v516_v15, %v469_v16  ;;  %v478_v20 = vmul.f32 %v516_v15, %v470_v17 }
 0x34e   :  { %v485_v21 = vadd.f32 %v517_v18, %v477_v19  ;;  %v486_v22 = vadd.f32 %v517_v18, %v478_v20 }
 0x350   :  { %v487_v23 = vmax.f32 %v485_v21, 0.0  ;;  %v488_v24 = vmax.f32 %v486_v22, 0.0 }
 0x352   :  { %489 = vst [vmem:[#allocation10] sm:$0xff] %v487_v23  ;;  %490 = vst [vmem:[#allocation10 + $0x8] sm:$0xff] %v488_v24 }
 0x353   :  { %817 = shalt.err (!%p814_p8)
}
 0x354   :  { %s818_s12 = scalar_lea.hbm %s1023_s10, 256 }
 0x355   :  { %p819_p9 = scmp.ne.s32.totalorder %s1023_s10, %s818_s12  ;;  %p822_p10 = scmp.lt.u32.totalorder %s818_s12, %s1023_s10 }
 0x357   :  { %p824_p11 = pnand %p822_p10, %p819_p9 }
 0x359   :  { %827 = shalt.err (!%p824_p11)
}
 0x35a   :  { %502 = dma.vmem_to_hbm [thread:$0]  %s497_s0, 256, %s1023_s10, [#allocation4], %s838_s25, %s838_s25, %s839_s26  }
 0x35b   :  { %834 = dma.done.wait [#allocation4], 256  }
 0x35c   :  { %835 = vsyncadd [#allocation4], 4294967040 }
 0x35d   :  { %506 = vsyncpa [#allocation3], 1 }
 0x35e   :  { %507 = vsyncpa [#allocation6], 1 }
 0x35f   :  { %508 = vsyncpa [#allocation9], 1 }
 0x360   :  { %509 = vsyncpa [#allocation4], 1 }

</bundles_post_ra>
